<compile_context>
chip_gen: v6e
topology: v6e:2x2x1
jax: 0.10.0
libtpu: 0.0.40
codegen_flags: <defaults>
</compile_context>

<pallas_src>
import functools

import jax
import jax.numpy as jnp
from jax.experimental import pallas as pl
from jax.experimental.pallas import tpu as pltpu

IN_FEATURES = 6
LAYER_DIMS = [6, 256, 128, 64, 1]


def affine_kernel(w_ref, b_ref, xT_ref, oT_ref):
    """out^T (1, TB) = (w_eff^T x^T) + b_eff, batch on lanes."""
    prod = w_ref[...] * xT_ref[...]                 # (6, TB)  VPU, lane-dense
    acc = jnp.sum(prod, axis=0, keepdims=True)      # (1, TB)  sublane reduce
    oT_ref[...] = (acc + b_ref[...]).astype(oT_ref.dtype)


def fold_affine_params(params):
    """Fold the activation-free Linear chain into one (6, 1) weight + (1, 1) bias."""
    (w1, b1), (w2, b2), (w3, b3), (w4, b4) = params
    w_eff = w1 @ w2 @ w3 @ w4                        # (6, 1)
    b_eff = ((b1 @ w2 + b2) @ w3 + b3) @ w4 + b4     # (1, 1)
    return w_eff, b_eff


@functools.partial(jax.jit, static_argnames=("tb",))
def neural_network_forward(x, params, *, tb=512):
    """x: (B, 6) float32 -> (B,) float32, same function as NeuralNetwork.forward."""
    B, F = x.shape
    w_eff, b_eff = fold_affine_params(params)        # (6, 1), (1, 1)

    # Batch-on-lanes layout: pad B up to a multiple of the lane tile (128-aligned).
    tb = min(tb, pl.cdiv(B, 128) * 128)
    Bp = pl.cdiv(B, tb) * tb
    xT = jnp.zeros((F, Bp), x.dtype).at[:, :B].set(x.T)

    outT = pl.pallas_call(
        affine_kernel,
        out_shape=jax.ShapeDtypeStruct((1, Bp), jnp.float32),
        grid_spec=pltpu.PrefetchScalarGridSpec(
            num_scalar_prefetch=0,
            grid=(Bp // tb,),
            in_specs=[
                pl.BlockSpec((F, 1), lambda i: (0, 0)),    # folded weight, VMEM-resident
                pl.BlockSpec((1, 1), lambda i: (0, 0)),    # folded bias,   VMEM-resident
                pl.BlockSpec((F, tb), lambda i: (0, i)),   # x^T batch tile (lane-dense)
            ],
            out_specs=pl.BlockSpec((1, tb), lambda i: (0, i)),
        ),
        compiler_params=pltpu.CompilerParams(
            dimension_semantics=("parallel",),             # megacore split on v7x
        ),
    )(w_eff, b_eff, xT)

    # nn.Flatten(0, 1): (B, 1) -> (B,)
    return outT[0, :B]


def init_params(key):
    """Deterministic init matching nn.Linear shapes (weights stored as (in, out))."""
    params = []
    for i in range(4):
        fan_in, fan_out = LAYER_DIMS[i], LAYER_DIMS[i + 1]
        key, kw, kb = jax.random.split(key, 3)
        bound = 1.0 / jnp.sqrt(fan_in)
        w = jax.random.uniform(kw, (fan_in, fan_out), jnp.float32, -bound, bound)
        b = jax.random.uniform(kb, (1, fan_out), jnp.float32, -bound, bound)
        params.append((w, b))
    return params


def reference_forward(x, params):
    """Unfused per-layer chain (mirrors the PyTorch module layer by layer)."""
    h = x
    for w, b in params:
        h = h @ w + b
    return h.reshape(h.shape[0])


if __name__ == "__main__":
    key = jax.random.PRNGKey(0)
    key, kx = jax.random.split(key)
    B = 8
    x = jax.random.normal(kx, (B, IN_FEATURES), jnp.float32)

    params = init_params(key)

    out = jax.block_until_ready(neural_network_forward(x, params))
    ref = reference_forward(x, params)
    assert out.shape == (B,)
    assert jnp.allclose(out, ref, atol=1e-4, rtol=1e-4)

    # Exercise the multi-tile grid path with a padded, non-128-aligned batch.
    key, kx2 = jax.random.split(key)
    B2 = 1000
    x2 = jax.random.normal(kx2, (B2, IN_FEATURES), jnp.float32)
    out2 = jax.block_until_ready(neural_network_forward(x2, params))
    ref2 = reference_forward(x2, params)
    assert out2.shape == (B2,)
    assert jnp.allclose(out2, ref2, atol=1e-4, rtol=1e-4)

    print("KERNEL_OK")
</pallas_src>

<mosaic_0001>
module attributes {stable_mosaic.version = 11 : i64} {
  func.func @affine_kernel(%arg0: i32, %arg1: memref<6x1xf32, #tpu.memory_space<vmem>>, %arg2: memref<1x1xf32, #tpu.memory_space<vmem>>, %arg3: memref<6x128xf32, #tpu.memory_space<vmem>>, %arg4: memref<1x128xf32, #tpu.memory_space<vmem>>) attributes {dimension_semantics = [#tpu.dimension_semantics<parallel>], iteration_bounds = array<i64: 1>, scalar_prefetch = 0 : i64, scratch_operands = 0 : i64, tpu.core_type = #tpu.core_type<tc>, window_params = [{pipeline_mode = #tpu.pipeline_mode<synchronous>, transform_indices = @transform_0, window_bounds = array<i64: 6, 1>}, {pipeline_mode = #tpu.pipeline_mode<synchronous>, transform_indices = @transform_1, window_bounds = array<i64: 1, 1>}, {transform_indices = @transform_2, window_bounds = array<i64: 6, 128>}, {transform_indices = @transform_3, window_bounds = array<i64: 1, 128>}]} {
    %c0 = arith.constant 0 : index
    %c0_0 = arith.constant 0 : index
    %0 = vector.load %arg1[%c0, %c0_0] : memref<6x1xf32, #tpu.memory_space<vmem>>, vector<6x1xf32>
    %c0_1 = arith.constant 0 : index
    %c0_2 = arith.constant 0 : index
    %1 = vector.load %arg3[%c0_1, %c0_2] : memref<6x128xf32, #tpu.memory_space<vmem>>, vector<6x128xf32>
    %2 = vector.broadcast %0 : vector<6x1xf32> to vector<6x128xf32>
    %3 = arith.mulf %2, %1 : vector<6x128xf32>
    %cst = arith.constant dense<0.000000e+00> : vector<128xf32>
    %4 = vector.multi_reduction <add>, %3, %cst [0] : vector<6x128xf32> to vector<128xf32>
    %5 = vector.shape_cast %4 : vector<128xf32> to vector<1x128xf32>
    %c0_3 = arith.constant 0 : index
    %c0_4 = arith.constant 0 : index
    %6 = vector.load %arg2[%c0_3, %c0_4] : memref<1x1xf32, #tpu.memory_space<vmem>>, vector<1x1xf32>
    %7 = vector.broadcast %6 : vector<1x1xf32> to vector<1x128xf32>
    %8 = arith.addf %5, %7 : vector<1x128xf32>
    %c0_5 = arith.constant 0 : index
    %c0_6 = arith.constant 0 : index
    %9 = vector.load %arg4[%c0_5, %c0_6] : memref<1x128xf32, #tpu.memory_space<vmem>>, vector<1x128xf32>
    tpu.vector_store %arg4[%c0_5, %c0_6], %8 {strides = array<i32>} : memref<1x128xf32, #tpu.memory_space<vmem>>, vector<1x128xf32>,
    return
  }
  func.func @transform_0(%arg0: i32) -> (i32, i32) {
    %c0_i32 = arith.constant 0 : i32
    %c0_i32_0 = arith.constant 0 : i32
    %c0_i32_1 = arith.constant 0 : i32
    return %c0_i32, %c0_i32_0 : i32, i32
  }
  func.func @transform_1(%arg0: i32) -> (i32, i32) {
    %c0_i32 = arith.constant 0 : i32
    %c0_i32_0 = arith.constant 0 : i32
    %c0_i32_1 = arith.constant 0 : i32
    return %c0_i32, %c0_i32_0 : i32, i32
  }
  func.func @transform_2(%arg0: i32) -> (i32, i32) {
    %c0_i32 = arith.constant 0 : i32
    %c0_i32_0 = arith.constant 0 : i32
    return %c0_i32, %arg0 : i32, i32
  }
  func.func @transform_3(%arg0: i32) -> (i32, i32) {
    %c0_i32 = arith.constant 0 : i32
    %c0_i32_0 = arith.constant 0 : i32
    return %c0_i32, %arg0 : i32, i32
  }
}

</mosaic_0001>

<bundles_post_ra>
// kernel: neural_network_forward.1
= control target key start
LH: loop header
LB: loop body
LE: loop exit
PB: predicated region body
PF: predicated region fallthrough
CT: control target
= control target key end

     0   :  { %v50_v0 = vmov 0   ;;  %vm24_vm0 = vcmask 1045504   ;;  %v38_v7 = vlaneseq  ;;  %s83_s0 = inlined_call_operand.vmem [shape: f32[6,1], index: 0, kind: input, shape index: {}]   ;;  %s84_s1 = inlined_call_operand.<no memory space> [shape: f32[1,1], index: 1, kind: input, shape index: {}]   ;;  %s85_s2 = inlined_call_operand.vmem [shape: f32[6,128], index: 2, kind: input, shape index: {}]   ;;  %s86_s3 = inlined_call_operand.vmem [shape: f32[1,128], index: 3, kind: output, shape index: {}]  }
   0x1   :  { %49 = vset.pattern.permute.xlu0 %v50_v0  ;;  %v16_v1 = vld [vmem:[%s83_s0] sm:$0x3f]  ;;  %v8_v2 = vstv %s84_s1 }
   0x2   :  { %20 = vperm.xlu0 %49, %v16_v1   ;;  %9 = vst [vmem:[#allocation2] sm:$0x1] %v8_v2  ;;  %v17_v4 = vld [vmem:[%s85_s2] sm:$0x3f]  ;;  %v39_v11 = vshrl.u32 %v38_v7, 7 }
   0x4   :  { %v40_v14 = vsub.s32 0, %v39_v11 }
   0x9   :  { %v32_v3 = vld [vmem:[#allocation2] sm:$0x1] }
   0xa   :  { %35 = vperm.xlu0 %49, %v32_v3  }
  0x7d   :  { %v21_v5 = vpop.permute.xlu0 %20 }
  0x7e   :  { %v23_v6 = vmul.f32 %v21_v5, %v17_v4 }
  0x80   :  { %v25_v8 = vsel %vm24_vm0, %v23_v6, 0.0 }
  0x81   :  { %v26_v9 = vrot.slane %v25_v8, 4 }
  0x83   :  { %v27_v10 = vadd.f32 %v26_v9, %v25_v8 }
  0x85   :  { %v28_v12 = vrot.slane %v27_v10, 2  ;;  %v36_v15 = vpop.permute.xlu0 %35 }
  0x86   :  { %v41_v18 = vrot.slane %v36_v15, %v40_v14 }
  0x87   :  { %v29_v13 = vadd.f32 %v28_v12, %v27_v10 }
  0x89   :  { %v30_v16 = vrot.slane %v29_v13, 1 }
  0x8b   :  { %v31_v17 = vadd.f32 %v30_v16, %v29_v13 }
  0x8d   :  { %v42_v19 = vadd.f32 %v41_v18, %v31_v17 }
  0x8f   :  { %43 = vst [vmem:[%s86_s3] sm:$0x1] %v42_v19 }

</bundles_post_ra>
